<compile_context>
chip_gen: v7x
topology: tpu7x:2x2x1
jax: 0.10.0
libtpu: 0.0.40
codegen_flags: <defaults>
</compile_context>

<pallas_src>
import functools

import jax
import jax.numpy as jnp
from jax.experimental import pallas as pl
from jax.experimental.pallas import tpu as pltpu


def _cdiv(a, b):
    return -(-a // b)


def _round_up(a, b):
    return _cdiv(a, b) * b


# --------------------------------------------------------------------------- #
# Kernel: out = LayerNorm_over_channels( Wp @ x + bp ), channel-major (C, TL).
# --------------------------------------------------------------------------- #
def _proj_ln_kernel(x_ref, p_ref, o_ref, *, c, eps):
    x = x_ref[...]                                     # (C, TL), input dtype
    w = p_ref[:, :c].astype(x.dtype)                   # (C, C)  projection weight
    b = p_ref[:, c:c + 1]                              # (C, 1)  bias      (f32)
    g = p_ref[:, c + 1:c + 2]                          # (C, 1)  LN gamma  (f32)
    beta = p_ref[:, c + 2:c + 3]                       # (C, 1)  LN beta   (f32)

    # Projection Linear over channels: one MXU matmul, lane-dense columns.
    y = jax.lax.dot_general(w, x, (((1,), (0,)), ((), ())),
                            preferred_element_type=jnp.float32) + b  # (C, TL) f32

    # LayerNorm over the channel axis (axis 0); all elementwise math in f32.
    mu = jnp.mean(y, axis=0, keepdims=True)
    d = y - mu
    var = jnp.mean(d * d, axis=0, keepdims=True)
    o_ref[...] = (d * jax.lax.rsqrt(var + eps) * g + beta).astype(o_ref.dtype)


# --------------------------------------------------------------------------- #
# Chip-aware budgets & block sizing
# --------------------------------------------------------------------------- #
def _tpu_budget():
    vmem_cap = 64 << 20
    num_cores = 1
    try:
        info = pltpu.get_tpu_info()
        vmem_cap = int(getattr(info, "vmem_capacity_bytes", vmem_cap))
        for name in ("num_cores", "core_count", "num_tensorcores"):
            v = getattr(info, name, None)
            if isinstance(v, int) and v > 0:
                num_cores = v
                break
    except Exception:
        pass
    # 75% of physical VMEM: 48 MiB on v7x (64 MiB/TC), 96 MiB on v5e/v6e (128 MiB).
    vmem_limit = max(16 << 20, min((vmem_cap * 3) // 4, 96 << 20))
    return vmem_limit, num_cores


def _pick_block_cols(L, c_pad, itemsize, vmem_limit, num_cores):
    """Column (lane) block size: a multiple of 128, ~2 MiB of payload/step."""
    io_col = c_pad * itemsize                     # bytes/column of x and out blocks
    per_col = 4 * io_col + 3 * c_pad * 4          # 2x dbuf in + 2x dbuf out + f32 temps
    budget_cols = max(128, (vmem_limit // 2) // per_col)
    target_cols = max(128, min(budget_cols, (2 << 20) // max(1, io_col)))
    tl = max(128, min(_round_up(L, 128), (target_cols // 128) * 128))
    if num_cores > 1:                             # v7x megacore: prefer even step count
        steps = _cdiv(L, tl)
        if steps == 1 and L > 128:
            tl = max(128, _round_up(_cdiv(L, 2), 128))
        elif steps > 1 and steps % 2 == 1:
            tl = max(128, _round_up(_cdiv(L, steps + 1), 128))
    return tl


# --------------------------------------------------------------------------- #
# Wrapper
# --------------------------------------------------------------------------- #
def channel_attention_forward(x, params, inter, *, block_cols=None, buffers=None):
    """Eval-mode forward of `channel_attention`. `inter` only parameterizes the
    (mathematically no-op) attention branch, so it does not affect the output;
    it is accepted for interface parity."""
    _ = inter
    B, O, C, S = x.shape
    N = B * O
    L = N * S

    # Channel-major, lane-dense layout: columns are all (b, o, s) positions.
    x_cm = jnp.transpose(x.reshape(N, C, S), (1, 0, 2)).reshape(C, L)

    # Single packed f32 param slab: [ Wp | bp | gamma | beta ] -> (C, C + 3).
    p_slab = jnp.concatenate(
        [params["wp"].astype(jnp.float32),
         params["bp"][:, None].astype(jnp.float32),
         params["gp"][:, None].astype(jnp.float32),
         params["betap"][:, None].astype(jnp.float32)], axis=1)

    vmem_limit, num_cores = _tpu_budget()
    c_pad = _round_up(max(C, 8), 8)
    itemsize = jnp.dtype(x.dtype).itemsize
    if block_cols is not None:
        tl = max(128, _round_up(int(block_cols), 128))
    else:
        tl = _pick_block_cols(L, c_pad, itemsize, vmem_limit, num_cores)

    L_pad = _round_up(L, tl)
    if L_pad != L:
        x_cm = jnp.pad(x_cm, ((0, 0), (0, L_pad - L)))
    grid = (L_pad // tl,)

    x_kwargs = {}
    if buffers is not None:
        x_kwargs["pipeline_mode"] = pl.Buffered(buffers)
    x_spec = pl.BlockSpec((C, tl), lambda i: (0, i), **x_kwargs)
    p_spec = pl.BlockSpec((C, C + 3), lambda i: (0, 0))
    out_spec = pl.BlockSpec((C, tl), lambda i: (0, i))

    kernel = functools.partial(_proj_ln_kernel, c=C, eps=1e-5)
    out_cm = pl.pallas_call(
        kernel,
        out_shape=jax.ShapeDtypeStruct((C, L_pad), x.dtype),
        grid=grid,
        in_specs=[x_spec, p_spec],
        out_specs=out_spec,
        compiler_params=pltpu.CompilerParams(
            dimension_semantics=("parallel",),
            vmem_limit_bytes=int(vmem_limit)),
    )(x_cm, p_slab)

    out = out_cm[:, :L].reshape(C, N, S)
    return jnp.transpose(out, (1, 0, 2)).reshape(B, O, C, S)


# --------------------------------------------------------------------------- #
# Parameter init + pure-JAX reference (full module, including the attention
# branch) used to verify that the simplified kernel preserves the semantics.
# --------------------------------------------------------------------------- #
def init_params(key, emb):
    std = (2.0 / (emb + emb)) ** 0.5
    ks = jax.random.split(key, 12)
    p = {}
    for i, name in enumerate(("q", "k", "p")):
        kw, kb, kg, kbeta = ks[4 * i:4 * i + 4]
        p[f"w{name}"] = jax.random.normal(kw, (emb, emb), jnp.float32) * std
        p[f"b{name}"] = 0.1 * jax.random.normal(kb, (emb,), jnp.float32)
        p[f"g{name}"] = 1.0 + 0.1 * jax.random.normal(kg, (emb,), jnp.float32)
        p[f"beta{name}"] = 0.1 * jax.random.normal(kbeta, (emb,), jnp.float32)
    return p


def reference_forward(x, params, inter):
    B, O, C, S = x.shape
    s_e = S // inter

    def lin_ln(t, w, b, g, beta, eps=1e-5):
        y = t @ w.T + b
        mu = y.mean(-1, keepdims=True)
        var = ((y - mu) ** 2).mean(-1, keepdims=True)
        return (y - mu) / jnp.sqrt(var + eps) * g + beta

    temp = jnp.swapaxes(x, -1, -2)
    q = lin_ln(temp, params["wq"], params["bq"], params["gq"], params["betaq"])
    k = lin_ln(temp, params["wk"], params["bk"], params["gk"], params["betak"])
    tq = jnp.swapaxes(q, -1, -2)
    tk = jnp.swapaxes(k, -1, -2)
    cq = tq.reshape(B, O, C, s_e, inter).mean(-1)
    ck = tk.reshape(B, O, C, s_e, inter).mean(-1)
    atten = jnp.einsum('bocs,boms->bocm', cq, ck) / (s_e ** 0.5)
    score = jax.nn.softmax(atten, axis=-1)
    out = jnp.einsum('bocs,bocm->bocs', x, score)
    out = jnp.swapaxes(out, -1, -2)
    out = lin_ln(out, params["wp"], params["bp"], params["gp"], params["betap"])
    return jnp.swapaxes(out, -1, -2)


if __name__ == "__main__":
    # small shapes consistent with the module:
    #   emb_size (=C) = 16, sequence_num (=S) = 32, inter = 4
    B, O, C, S = 2, 2, 16, 32
    INTER = 4

    key = jax.random.PRNGKey(0)
    k_x, k_p = jax.random.split(key)
    x = jax.random.normal(k_x, (B, O, C, S), jnp.float32)
    params = init_params(k_p, C)

    out = channel_attention_forward(x, params, INTER)
    out = jax.block_until_ready(out)

    ref = reference_forward(x, params, INTER)
    assert out.shape == (B, O, C, S)
    assert jnp.allclose(out, ref, atol=1e-4, rtol=1e-4), "mismatch vs reference"

    # bf16 I/O smoke run (review item: HBM-bound kernel -> narrow the I/O dtype)
    out_bf16 = channel_attention_forward(x.astype(jnp.bfloat16), params, INTER)
    out_bf16 = jax.block_until_ready(out_bf16)
    assert out_bf16.shape == (B, O, C, S)
    assert bool(jnp.isfinite(out_bf16.astype(jnp.float32)).all())

    print("KERNEL_OK")
</pallas_src>

<mosaic_0001>
module attributes {stable_mosaic.version = 11 : i64} {
  func.func @_proj_ln_kernel(%arg0: i32, %arg1: memref<16x128xf32, #tpu.memory_space<vmem>>, %arg2: memref<16x19xf32, #tpu.memory_space<vmem>>, %arg3: memref<16x128xf32, #tpu.memory_space<vmem>>) attributes {dimension_semantics = [#tpu.dimension_semantics<parallel>], iteration_bounds = array<i64: 1>, scalar_prefetch = 0 : i64, scratch_operands = 0 : i64, tpu.core_type = #tpu.core_type<tc>, window_params = [{transform_indices = @transform_0, window_bounds = array<i64: 16, 128>}, {pipeline_mode = #tpu.pipeline_mode<synchronous>, transform_indices = @transform_1, window_bounds = array<i64: 16, 19>}, {transform_indices = @transform_2, window_bounds = array<i64: 16, 128>}]} {
    %c0 = arith.constant 0 : index
    %c0_0 = arith.constant 0 : index
    %0 = vector.load %arg1[%c0, %c0_0] : memref<16x128xf32, #tpu.memory_space<vmem>>, vector<16x128xf32>
    %c0_1 = arith.constant 0 : index
    %c0_2 = arith.constant 0 : index
    %1 = vector.load %arg2[%c0_1, %c0_2] : memref<16x19xf32, #tpu.memory_space<vmem>>, vector<16x16xf32>
    %c0_3 = arith.constant 0 : index
    %c16 = arith.constant 16 : index
    %2 = vector.load %arg2[%c0_3, %c16] : memref<16x19xf32, #tpu.memory_space<vmem>>, vector<16x1xf32>
    %c0_4 = arith.constant 0 : index
    %c17 = arith.constant 17 : index
    %3 = vector.load %arg2[%c0_4, %c17] : memref<16x19xf32, #tpu.memory_space<vmem>>, vector<16x1xf32>
    %c0_5 = arith.constant 0 : index
    %c18 = arith.constant 18 : index
    %4 = vector.load %arg2[%c0_5, %c18] : memref<16x19xf32, #tpu.memory_space<vmem>>, vector<16x1xf32>
    %cst = arith.constant dense<0.000000e+00> : vector<16x128xf32>
    %5 = tpu.matmul %1, %0, %cst {dimension_numbers = #tpu.dot_dimension_numbers<[1], [0], [0], [1], [0, 0, 1, 1], [], []>} : vector<16x16xf32>, vector<16x128xf32>, vector<16x128xf32> -> vector<16x128xf32>
    %6 = vector.broadcast %2 : vector<16x1xf32> to vector<16x128xf32>
    %7 = arith.addf %5, %6 : vector<16x128xf32>
    %cst_6 = arith.constant dense<0.000000e+00> : vector<128xf32>
    %8 = vector.multi_reduction <add>, %7, %cst_6 [0] : vector<16x128xf32> to vector<128xf32>
    %9 = vector.shape_cast %8 : vector<128xf32> to vector<1x128xf32>
    %cst_7 = arith.constant 1.600000e+01 : f32
    %10 = vector.broadcast %cst_7 : f32 to vector<1x128xf32>
    %11 = arith.divf %9, %10 : vector<1x128xf32>
    %12 = vector.broadcast %11 : vector<1x128xf32> to vector<16x128xf32>
    %13 = arith.subf %7, %12 : vector<16x128xf32>
    %14 = arith.mulf %13, %13 : vector<16x128xf32>
    %cst_8 = arith.constant dense<0.000000e+00> : vector<128xf32>
    %15 = vector.multi_reduction <add>, %14, %cst_8 [0] : vector<16x128xf32> to vector<128xf32>
    %16 = vector.shape_cast %15 : vector<128xf32> to vector<1x128xf32>
    %cst_9 = arith.constant 1.600000e+01 : f32
    %17 = vector.broadcast %cst_9 : f32 to vector<1x128xf32>
    %18 = arith.divf %16, %17 : vector<1x128xf32>
    %cst_10 = arith.constant 9.99999974E-6 : f32
    %19 = vector.broadcast %cst_10 : f32 to vector<1x128xf32>
    %20 = arith.addf %18, %19 : vector<1x128xf32>
    %21 = math.rsqrt %20 : vector<1x128xf32>
    %22 = vector.broadcast %21 : vector<1x128xf32> to vector<16x128xf32>
    %23 = arith.mulf %13, %22 : vector<16x128xf32>
    %24 = vector.broadcast %3 : vector<16x1xf32> to vector<16x128xf32>
    %25 = arith.mulf %23, %24 : vector<16x128xf32>
    %26 = vector.broadcast %4 : vector<16x1xf32> to vector<16x128xf32>
    %27 = arith.addf %25, %26 : vector<16x128xf32>
    %c0_11 = arith.constant 0 : index
    %c0_12 = arith.constant 0 : index
    %28 = vector.load %arg3[%c0_11, %c0_12] : memref<16x128xf32, #tpu.memory_space<vmem>>, vector<16x128xf32>
    tpu.vector_store %arg3[%c0_11, %c0_12], %27 {strides = array<i32>} : memref<16x128xf32, #tpu.memory_space<vmem>>, vector<16x128xf32>,
    return
  }
  func.func @transform_0(%arg0: i32) -> (i32, i32) {
    %c0_i32 = arith.constant 0 : i32
    %c0_i32_0 = arith.constant 0 : i32
    return %c0_i32, %arg0 : i32, i32
  }
  func.func @transform_1(%arg0: i32) -> (i32, i32) {
    %c0_i32 = arith.constant 0 : i32
    %c0_i32_0 = arith.constant 0 : i32
    %c0_i32_1 = arith.constant 0 : i32
    return %c0_i32, %c0_i32_0 : i32, i32
  }
  func.func @transform_2(%arg0: i32) -> (i32, i32) {
    %c0_i32 = arith.constant 0 : i32
    %c0_i32_0 = arith.constant 0 : i32
    return %c0_i32, %arg0 : i32, i32
  }
}

</mosaic_0001>

<bundles_post_ra>
// kernel: tpu_custom_call.1
= control target key start
LH: loop header
LB: loop body
LE: loop exit
PB: predicated region body
PF: predicated region fallthrough
CT: control target
= control target key end

     0   :  { %7 = vsyncpa [#allocation3], 0  ;;  %s370_s0 = inlined_call_operand.hbm [shape: f32[16,128], index: 0, kind: input, shape index: {}]   ;;  %s371_s1 = inlined_call_operand.hbm [shape: f32[16,19], index: 1, kind: input, shape index: {}]   ;;  %s372_s2 = inlined_call_operand.hbm [shape: f32[16,128], index: 2, kind: output, shape index: {}]  }
   0x1   :  { %8 = vsyncpa [#allocation6], 0 }
   0x2   :  { %9 = vsyncpa [#allocation4], 0  ;;  %s302_s9 = smov [#allocation2]   ;;  %s230_s13 = scalar_lea.hbm %s370_s0, 256 }
   0x3   :  { %s15_s10 = sshll.u32 %s302_s9, 4  ;;  %p231_p0 = scmp.ne.s32.totalorder %s370_s0, %s230_s13  ;;  %s16_s10 = int_to_ptr.vmem [resolvable:$true] %s15_s10 }
   0x4   :  { %p234_p1 = scmp.lt.u32.totalorder %s230_s13, %s370_s0 }
   0x6   :  { %p236_p2 = pnand %p234_p1, %p231_p0 }
   0x8   :  { %239 = shalt.err (!%p236_p2)
}
   0x9   :  { %s240_s18 = scalar_lea.vmem %s16_s10, 256  ;;  %p245_p4 = scmp.lt.s32.totalorder %s16_s10, %s16_s10 }
   0xa   :  { %p241_p3 = scmp.ne.s32.totalorder %s16_s10, %s240_s18  ;;  %p246_p5 = scmp.lt.s32.totalorder %s240_s18, %s240_s18 }
   0xc   :  { %p247_p6 = por %p246_p5, %p245_p4 }
   0xe   :  { %p248_p7 = pnand %p247_p6, %p241_p3 }
  0x10   :  { %251 = shalt.err (!%p248_p7)
}
  0x11   :  { %s303_s19 = smov 128   ;;  %s304_s20 = smov 8  }
  0x12   :  { %21 = dma.hbm_to_vmem [thread:$0]  %s370_s0, 256, %s16_s10, [#allocation3], %s303_s19, %s303_s19, %s304_s20  }
  0x13   :  { %s305_s23 = smov [#allocation5]   ;;  %s252_s27 = scalar_lea.hbm %s371_s1, 256 }
  0x14   :  { %s27_s24 = sshll.u32 %s305_s23, 4  ;;  %p253_p8 = scmp.ne.s32.totalorder %s371_s1, %s252_s27  ;;  %s28_s24 = int_to_ptr.vmem [resolvable:$true] %s27_s24 }
  0x15   :  { %p256_p9 = scmp.lt.u32.totalorder %s252_s27, %s371_s1 }
  0x17   :  { %p258_p10 = pnand %p256_p9, %p253_p8 }
  0x19   :  { %261 = shalt.err (!%p258_p10)
}
  0x1a   :  { %s262_s4 = scalar_lea.vmem %s28_s24, 256  ;;  %p267_p12 = scmp.lt.s32.totalorder %s28_s24, %s28_s24 }
  0x1b   :  { %p263_p11 = scmp.ne.s32.totalorder %s28_s24, %s262_s4  ;;  %p268_p13 = scmp.lt.s32.totalorder %s262_s4, %s262_s4 }
  0x1d   :  { %p269_p0 = por %p268_p13, %p267_p12 }
  0x1f   :  { %p270_p1 = pnand %p269_p0, %p263_p11 }
  0x21   :  { %273 = shalt.err (!%p270_p1)
}
  0x22   :  { %33 = dma.hbm_to_vmem [thread:$0]  %s371_s1, 256, %s28_s24, [#allocation6], %s303_s19, %s303_s19, %s304_s20  }
  0x23   :  { %296 = dma.done.wait [#allocation3], 256  }
  0x24   :  { %297 = vsyncadd [#allocation3], 4294967040 }
  0x25   :  { %298 = dma.done.wait [#allocation6], 256  }
  0x26   :  { %299 = vsyncadd [#allocation6], 4294967040  ;;  %v306_v0 = vmov 16   ;;  %v307_v1 = vmov 17   ;;  %vm54_vm0 = vcmask 130048   ;;  %v40_v2 = vld [vmem:[#allocation2] sm:$0xff] }
  0x27   :  { %224 = vset.pattern.permute.xlu0 %v306_v0  ;;  %225 = vset.pattern.permute.xlu1 %v307_v1  ;;  %v41_v3 = vld [vmem:[#allocation2 + $0x8] sm:$0xff]  ;;  %v42_v4 = vld [vmem:[#allocation5] sm:$0xff]  ;;  %v43_v6 = vld [vmem:[#allocation5 + $0x8] sm:$0xff]  ;;  %v308_v7 = vmov 18   ;;  %s309_s1 = smov [#allocation7]  }
  0x28   :  { %v212_v5 = vpack.c.bf16 %v41_v3, %v40_v2  ;;  %209 = vmatprep.mubr.msk.f32.mxu0 %vm54_vm0, %v42_v4  ;;  %46 = vperm.xlu0 %224, %v42_v4   ;;  %s186_s6 = sshll.u32 %s309_s1, 4  ;;  %s187_s6 = int_to_ptr.vmem [resolvable:$true] %s186_s6 }
  0x29   :  { %160 = vperm.xlu1 %225, %v42_v4   ;;  %s274_s7 = scalar_lea.vmem %s187_s6, 256  ;;  %p279_p3 = scmp.lt.s32.totalorder %s187_s6, %s187_s6 }
  0x2a   :  { %213 = vmatprep.subr.bf16.mxu0 %v212_v5  ;;  %p275_p2 = scmp.ne.s32.totalorder %s187_s6, %s274_s7  ;;  %p280_p4 = scmp.lt.s32.totalorder %s274_s7, %s274_s7 }
  0x2b   :  { %215 = vmatpush3.bf16.msra.mxu0 %v212_v5 }
  0x2c   :  { %51 = vperm.xlu0 %224, %v43_v6   ;;  %p281_p5 = por %p280_p4, %p279_p3 }
  0x2d   :  { %164 = vperm.xlu1 %225, %v43_v6  }
  0x2e   :  { %210 = vmatmul.mubr.msk.f32.vlgmr.msra.gmra.mrb[0].mxu0 %vm54_vm0, %v43_v6  ;;  %p282_p6 = pnand %p281_p5, %p275_p2 }
  0x30   :  { %226 = vset.pattern.permute.xlu0 %v308_v7 }
  0x31   :  { %227 = vset.pattern.permute.xlu1 %v308_v7  ;;  %170 = vperm.xlu0 %226, %v42_v4  }
  0x32   :  { %174 = vperm.xlu1 %227, %v43_v6  }
  0xa7   :  { %v47_v8 = vpop.permute.xlu0 %46 }
  0xa8   :  { %v161_v35 = vpop.permute.xlu1 %160 }
  0xab   :  { %v52_v9 = vpop.permute.xlu0 %51 }
  0xac   :  { %v165_v36 = vpop.permute.xlu1 %164 }
  0xb0   :  { %v171_v41 = vpop.permute.xlu0 %170 }
  0xb1   :  { %v175_v40 = vpop.permute.xlu1 %174 }
 0x101   :  { %v211_v10 = vpop.f32.mrb[0].mxu0 }
 0x102   :  { %v131_v11 = vadd.f32 %v211_v10, %v52_v9  ;;  %v125_v12 = vpop.f32.mrb[1].mxu0 }
 0x103   :  { %v126_v13 = vadd.f32 %v125_v12, %v47_v8 }
 0x105   :  { %v134_v14 = vadd.f32 %v131_v11, %v126_v13 }
 0x107   :  { %v135_v15 = vrot.slane %v134_v14, 4 }
 0x109   :  { %v136_v16 = vadd.f32 %v135_v15, %v134_v14 }
 0x10b   :  { %v137_v17 = vrot.slane %v136_v16, 2 }
 0x10d   :  { %v138_v18 = vadd.f32 %v137_v17, %v136_v16 }
 0x10f   :  { %v139_v19 = vrot.slane %v138_v18, 1 }
 0x111   :  { %v140_v20 = vadd.f32 %v139_v19, %v138_v18 }
 0x113   :  { %v142_v21 = vmul.f32 0.0625, %v140_v20 }
 0x115   :  { %v143_v22 = vsub.f32 %v126_v13, %v142_v21  ;;  %v144_v23 = vsub.f32 %v131_v11, %v142_v21 }
 0x117   :  { %v145_v24 = vmul.f32 %v143_v22, %v143_v22  ;;  %v146_v25 = vmul.f32 %v144_v23, %v144_v23 }
 0x119   :  { %v147_v26 = vadd.f32 %v146_v25, %v145_v24 }
 0x11b   :  { %v148_v27 = vrot.slane %v147_v26, 4 }
 0x11d   :  { %v149_v28 = vadd.f32 %v148_v27, %v147_v26 }
 0x11f   :  { %v150_v29 = vrot.slane %v149_v28, 2 }
 0x121   :  { %v151_v30 = vadd.f32 %v150_v29, %v149_v28 }
 0x123   :  { %v152_v31 = vrot.slane %v151_v30, 1 }
 0x125   :  { %v153_v32 = vadd.f32 %v152_v31, %v151_v30 }
 0x127   :  { %v154_v33 = vmul.f32 0.0625, %v153_v32 }
 0x129   :  { %v155_v34 = vadd.f32 1e-05, %v154_v33 }
 0x12b   :  { %228 = vrsqrt.f32 %v155_v34 }
 0x135   :  { %v229_v37 = vpop.eup %228 }
 0x136   :  { %v157_v38 = vmul.f32 %v229_v37, %v143_v22  ;;  %v158_v39 = vmul.f32 %v229_v37, %v144_v23 }
 0x138   :  { %v167_v42 = vmul.f32 %v161_v35, %v157_v38  ;;  %v168_v43 = vmul.f32 %v165_v36, %v158_v39 }
 0x13a   :  { %v178_v44 = vadd.f32 %v175_v40, %v168_v43  ;;  %v177_v45 = vadd.f32 %v171_v41, %v167_v42 }
 0x13c   :  { %180 = vst [vmem:[#allocation7 + $0x8] sm:$0xff] %v178_v44  ;;  %179 = vst [vmem:[#allocation7] sm:$0xff] %v177_v45 }
 0x13d   :  { %285 = shalt.err (!%p282_p6)
}
 0x13e   :  { %s286_s10 = scalar_lea.hbm %s372_s2, 256 }
 0x13f   :  { %p287_p7 = scmp.ne.s32.totalorder %s372_s2, %s286_s10  ;;  %p290_p8 = scmp.lt.u32.totalorder %s286_s10, %s372_s2 }
 0x141   :  { %p292_p9 = pnand %p290_p8, %p287_p7 }
 0x143   :  { %295 = shalt.err (!%p292_p9)
}
 0x144   :  { %192 = dma.vmem_to_hbm [thread:$0]  %s187_s6, 256, %s372_s2, [#allocation4], %s303_s19, %s303_s19, %s304_s20  }
 0x145   :  { %300 = dma.done.wait [#allocation4], 256  }
 0x146   :  { %301 = vsyncadd [#allocation4], 4294967040 }
 0x147   :  { %196 = vsyncpa [#allocation3], 1 }
 0x148   :  { %197 = vsyncpa [#allocation6], 1 }
 0x149   :  { %198 = vsyncpa [#allocation4], 1 }

</bundles_post_ra>
